<compile_context>
chip_gen: v5e
topology: v5e:2x2
jax: 0.10.0
libtpu: 0.0.40
codegen_flags: <defaults>
</compile_context>

<pallas_src>
import math
import functools

import numpy as np
import jax
import jax.numpy as jnp
from jax.experimental import pallas as pl
from jax.experimental.pallas import tpu as pltpu


# ----------------------------------------------------------------------------
# Pallas kernels
# ----------------------------------------------------------------------------
def _mm_kernel(x_ref, w_ref, b_ref, o_ref, acc_ref, *, relu):
    k = pl.program_id(2)

    @pl.when(k == 0)
    def _init():
        acc_ref[...] = jnp.zeros_like(acc_ref)

    acc_ref[...] += jnp.dot(x_ref[...], w_ref[...],
                            preferred_element_type=jnp.float32)

    @pl.when(k == pl.num_programs(2) - 1)
    def _finalize():
        y = acc_ref[...] + b_ref[...]
        if relu:
            y = jnp.maximum(y, 0.0)
        o_ref[...] = y.astype(o_ref.dtype)


def _mm_res_kernel(x_ref, w_ref, b_ref, r_ref, o_ref, acc_ref, *, relu):
    k = pl.program_id(2)

    @pl.when(k == 0)
    def _init():
        acc_ref[...] = jnp.zeros_like(acc_ref)

    acc_ref[...] += jnp.dot(x_ref[...], w_ref[...],
                            preferred_element_type=jnp.float32)

    @pl.when(k == pl.num_programs(2) - 1)
    def _finalize():
        y = acc_ref[...] + b_ref[...] + r_ref[...].astype(jnp.float32)
        if relu:
            y = jnp.maximum(y, 0.0)
        o_ref[...] = y.astype(o_ref.dtype)


def _max9_kernel(*refs):
    # refs = 9 input refs + 1 output ref
    o_ref = refs[-1]
    m = refs[0][...]
    for r in refs[1:9]:
        m = jnp.maximum(m, r[...])
    o_ref[...] = m


def _round_up(x, m):
    return (x + m - 1) // m * m


# ----------------------------------------------------------------------------
# Tiled matmul: out = act((x @ w) + bias [+ residual])
# ----------------------------------------------------------------------------
def matmul_bias_act(x, w, bias, residual=None, relu=False,
                    out_dtype=jnp.bfloat16, compute_dtype=jnp.bfloat16):
    M, K = x.shape
    K2, N = w.shape
    assert K == K2

    # Per-layer tile selection (fill the 256-wide MXU when possible, keep
    # tiny-M layers from padding M to 128).
    tm = 128 if M >= 128 else _round_up(M, 8)
    Mp = _round_up(M, tm)
    Np = _round_up(N, 128)
    tn = 256 if Np % 256 == 0 else 128
    Kp = _round_up(K, 128)
    tk = 512 if Kp % 512 == 0 else (256 if Kp % 256 == 0 else 128)

    xp = jnp.pad(x.astype(compute_dtype), ((0, Mp - M), (0, Kp - K)))
    wp = jnp.pad(w.astype(compute_dtype), ((0, Kp - K), (0, Np - N)))
    bp = jnp.pad(bias.astype(jnp.float32), (0, Np - N)).reshape(1, Np)

    operands = [xp, wp, bp]
    in_specs = [
        pl.BlockSpec((tm, tk), lambda i, j, k: (i, k)),
        pl.BlockSpec((tk, tn), lambda i, j, k: (k, j)),
        pl.BlockSpec((1, tn), lambda i, j, k: (0, j)),
    ]
    if residual is not None:
        rp = jnp.pad(residual.astype(compute_dtype),
                     ((0, Mp - M), (0, Np - N)))
        operands.append(rp)
        in_specs.append(pl.BlockSpec((tm, tn), lambda i, j, k: (i, j)))
        kern = functools.partial(_mm_res_kernel, relu=relu)
    else:
        kern = functools.partial(_mm_kernel, relu=relu)

    grid = (Mp // tm, Np // tn, Kp // tk)
    out = pl.pallas_call(
        kern,
        out_shape=jax.ShapeDtypeStruct((Mp, Np), out_dtype),
        grid_spec=pltpu.PrefetchScalarGridSpec(
            num_scalar_prefetch=0,
            grid=grid,
            in_specs=in_specs,
            out_specs=pl.BlockSpec((tm, tn), lambda i, j, k: (i, j)),
            scratch_shapes=[pltpu.VMEM((tm, tn), jnp.float32)],
        ),
        compiler_params=pltpu.CompilerParams(
            dimension_semantics=("parallel", "parallel", "arbitrary")),
    )(*operands)
    if Mp == M and Np == N:
        return out
    return out[:M, :N]


# ----------------------------------------------------------------------------
# Conv (im2col, NHWC) and 3x3/s2 max-pool built on the Pallas kernels
# ----------------------------------------------------------------------------
def conv2d_im2col(x, wmat, bias, *, KH, KW, stride, padding, relu,
                  residual=None, out_dtype=jnp.bfloat16,
                  compute_dtype=jnp.bfloat16):
    """x: [B,H,W,C] NHWC; wmat: [C*KH*KW, OC] (BN scale prefolded); bias: [OC]."""
    B, H, W, C = x.shape
    OC = wmat.shape[1]
    OH = (H + 2 * padding - KH) // stride + 1
    OW = (W + 2 * padding - KW) // stride + 1

    xc = x.astype(compute_dtype)
    if padding:
        xc = jnp.pad(xc, ((0, 0), (padding, padding), (padding, padding), (0, 0)))

    if KH == 1 and KW == 1:
        patches = xc[:, ::stride, ::stride, :].reshape(B * OH * OW, C)
    else:
        cols = []
        for kh in range(KH):
            for kw in range(KW):
                cols.append(xc[:, kh:kh + stride * (OH - 1) + 1:stride,
                               kw:kw + stride * (OW - 1) + 1:stride, :])
        # [B,OH,OW,C,KH*KW] -> K index = c*KH*KW + kh*KW + kw (matches PyTorch
        # weight.reshape(OC, C*KH*KW)); no large transpose needed in NHWC.
        patches = jnp.stack(cols, axis=-1).reshape(B * OH * OW, C * KH * KW)

    res_mat = None
    if residual is not None:
        res_mat = residual.reshape(B * OH * OW, OC)

    out = matmul_bias_act(patches, wmat, bias, residual=res_mat, relu=relu,
                          out_dtype=out_dtype, compute_dtype=compute_dtype)
    return out.reshape(B, OH, OW, OC)


def maxpool2d_3x3_s2_p1(x):
    """x: [B,H,W,C] NHWC -> [B,OH,OW,C]; tiled lane-dense 9-way max kernel."""
    B, H, W, C = x.shape
    OH = (H + 2 - 3) // 2 + 1
    OW = (W + 2 - 3) // 2 + 1
    xp = jnp.pad(x, ((0, 0), (1, 1), (1, 1), (0, 0)),
                 constant_values=-jnp.inf)
    views = []
    for kh in range(3):
        for kw in range(3):
            views.append(xp[:, kh:kh + 2 * (OH - 1) + 1:2,
                            kw:kw + 2 * (OW - 1) + 1:2, :])
    M = B * OH * OW * C
    LANE, SUB = 512, 16
    blk = LANE * SUB
    Mp = _round_up(M, blk)
    flats = [jnp.pad(v.reshape(-1), (0, Mp - M)).reshape(Mp // LANE, LANE)
             for v in views]
    out = pl.pallas_call(
        _max9_kernel,
        out_shape=jax.ShapeDtypeStruct((Mp // LANE, LANE), x.dtype),
        grid_spec=pltpu.PrefetchScalarGridSpec(
            num_scalar_prefetch=0,
            grid=(Mp // blk,),
            in_specs=[pl.BlockSpec((SUB, LANE), lambda i: (i, 0))] * 9,
            out_specs=pl.BlockSpec((SUB, LANE), lambda i: (i, 0)),
        ),
        compiler_params=pltpu.CompilerParams(
            dimension_semantics=("parallel",)),
    )(*flats)
    return out.reshape(-1)[:M].reshape(B, OH, OW, C)


# ----------------------------------------------------------------------------
# ResNet-34 (conv1 -> 1-channel input, fc -> Dropout + Linear), eval mode
# ----------------------------------------------------------------------------
_RESNET34_CFG = [(64, 3, 1), (128, 4, 2), (256, 6, 2), (512, 3, 2)]


def _init_conv(key, oc, ic, kh, kw):
    fan_in = ic * kh * kw
    return jax.random.normal(key, (oc, ic, kh, kw), jnp.float32) / math.sqrt(fan_in)


def _init_bn(key, c):
    k1, k2, k3, k4 = jax.random.split(key, 4)
    return dict(
        gamma=1.0 + 0.1 * jax.random.normal(k1, (c,), jnp.float32),
        beta=0.1 * jax.random.normal(k2, (c,), jnp.float32),
        mean=0.1 * jax.random.normal(k3, (c,), jnp.float32),
        var=1.0 + 0.1 * jnp.abs(jax.random.normal(k4, (c,), jnp.float32)),
    )


def _bn_scale_bias(bn, eps=1e-5):
    scale = bn['gamma'] / jnp.sqrt(bn['var'] + eps)
    bias = bn['beta'] - bn['mean'] * scale
    return scale, bias


def _fold_conv_bn(w, bn):
    """Fold eval-mode BN into the conv weights; return bf16 [K, OC] + f32 bias."""
    scale, bias = _bn_scale_bias(bn)
    oc = w.shape[0]
    wmat = (w.reshape(oc, -1) * scale[:, None]).T.astype(jnp.bfloat16)
    return {'w': wmat, 'b': bias.astype(jnp.float32)}


def build_resnet34_params(key, num_classes, in_channels=1):
    # TODO(synk): torchvision "pretrained=True" weights replaced by deterministic
    # synthetic init (no checkpoint loading in this synthetic kernel).
    params = {}
    key, kc, kb = jax.random.split(key, 3)
    params['conv1'] = _fold_conv_bn(_init_conv(kc, 64, in_channels, 7, 7),
                                    _init_bn(kb, 64))
    blocks, block_cfg = [], []
    in_c = 64
    for out_c, n_blocks, first_stride in _RESNET34_CFG:
        for bi in range(n_blocks):
            stride = first_stride if bi == 0 else 1
            has_ds = (stride != 1) or (in_c != out_c)
            blk = {}
            key, k1, k2, k3, k4 = jax.random.split(key, 5)
            blk['conv1'] = _fold_conv_bn(_init_conv(k1, out_c, in_c, 3, 3),
                                         _init_bn(k2, out_c))
            blk['conv2'] = _fold_conv_bn(_init_conv(k3, out_c, out_c, 3, 3),
                                         _init_bn(k4, out_c))
            if has_ds:
                key, k5, k6 = jax.random.split(key, 3)
                blk['down'] = _fold_conv_bn(_init_conv(k5, out_c, in_c, 1, 1),
                                            _init_bn(k6, out_c))
            blocks.append(blk)
            block_cfg.append((stride, has_ds))
            in_c = out_c
    params['blocks'] = blocks
    key, k1, k2 = jax.random.split(key, 3)
    params['fc_w'] = jax.random.normal(k1, (512, num_classes), jnp.float32) / math.sqrt(512)
    params['fc_b'] = 0.01 * jax.random.normal(k2, (num_classes,), jnp.float32)
    return params, block_cfg


def resnet34_forward(params, block_cfg, frame_nchw):
    x = jnp.transpose(frame_nchw, (0, 2, 3, 1))           # NCHW -> NHWC
    x = conv2d_im2col(x, params['conv1']['w'], params['conv1']['b'],
                      KH=7, KW=7, stride=2, padding=3, relu=True)
    x = maxpool2d_3x3_s2_p1(x)
    for blk, (stride, has_ds) in zip(params['blocks'], block_cfg):
        identity = x
        out = conv2d_im2col(x, blk['conv1']['w'], blk['conv1']['b'],
                            KH=3, KW=3, stride=stride, padding=1, relu=True)
        if has_ds:
            identity = conv2d_im2col(x, blk['down']['w'], blk['down']['b'],
                                     KH=1, KW=1, stride=stride, padding=0,
                                     relu=False)
        # conv2 with residual add + ReLU fused into the matmul epilogue.
        x = conv2d_im2col(out, blk['conv2']['w'], blk['conv2']['b'],
                          KH=3, KW=3, stride=1, padding=1, relu=True,
                          residual=identity)
    feat = jnp.mean(x.astype(jnp.float32), axis=(1, 2))   # adaptive avgpool(1,1)
    # Dropout(0.1) is identity in eval mode.
    logits = matmul_bias_act(feat, params['fc_w'], params['fc_b'],
                             relu=False, out_dtype=jnp.float32,
                             compute_dtype=jnp.bfloat16)
    return logits


def crop_and_resize_to_resolution(x, output_resolution=(224, 224)):
    B, C, H, W = x.shape
    if H > W:
        h = H // 2
        x = x[:, :, h - W // 2:h + W // 2, :]
    else:
        h = W // 2
        x = x[:, :, :, h - H // 2:h + H // 2]
    # F.interpolate(size=...) default mode is 'nearest': src = floor(dst*in/out)
    _, _, Hc, Wc = x.shape
    rows = (jnp.arange(output_resolution[0]) * Hc) // output_resolution[0]
    cols = (jnp.arange(output_resolution[1]) * Wc) // output_resolution[1]
    return x[:, :, rows][:, :, :, cols]


# ----------------------------------------------------------------------------
# QuantizationLayer (host-side numpy; 5x5 blur conv runs in the Pallas matmul)
# ----------------------------------------------------------------------------
_BLUR_WMAT = np.full((25, 1), 0.04, dtype=np.float32)      # sums to 1.0


def _outlier1d(points, thresh=3.5):
    # TODO(synk): outlier1d is not defined in the provided source; the standard
    # median-absolute-deviation outlier test is used as a best-effort stand-in.
    points = np.asarray(points, dtype=np.float64)
    median = np.median(points)
    diff = np.abs(points - median)
    mad = np.median(diff)
    modified_z = 0.6745 * diff / (mad + 1e-12)
    return modified_z > thresh


@jax.jit
def _blur5x5(a):   # a: [B, S, D] -> grouped 5x5 box blur (same filter per group)
    B, S, D = a.shape
    out = conv2d_im2col(a.reshape(B, S, D, 1), jnp.asarray(_BLUR_WMAT),
                        jnp.zeros((1,), jnp.float32),
                        KH=5, KW=5, stride=1, padding=2, relu=False,
                        out_dtype=jnp.float32, compute_dtype=jnp.float32)
    return out.reshape(B, S, D)


def quantization_layer_forward(events, dim, mode=1):
    """Port of QuantizationLayer.forward; events: list of np.ndarray [N, 5]
    with columns (x, y, t, p, b).  Returns frame [B, 1, H, W] float32."""
    H, W = dim
    B = len(events)
    S = 48
    sIdx = 3
    endBias = 10
    eIdx = S - endBias

    alongX = np.zeros((B, S, W), dtype=np.int32)
    alongY = np.zeros((B, S, H), dtype=np.int32)
    xy_batch, segmentLen_batch = [], []
    for bi in range(B):
        ev = np.asarray(events[bi])
        x, y, t, p, b = ev.T
        segmentLen = len(x) // S
        segmentLen_batch.append(segmentLen)
        resultLen = S * segmentLen
        chunks = np.repeat(np.arange(S), segmentLen)
        # host-side scatter-add histogram (torch .put_(..., accumulate=True))
        np.add.at(alongX[bi], (chunks, x[:resultLen].astype(np.int64)), 1)
        np.add.at(alongY[bi], (chunks, y[:resultLen].astype(np.int64)), 1)
        xy_batch.append((x, y))
    segmentLen_batch = np.asarray(segmentLen_batch, dtype=np.float32)

    def _project(along, D):
        a = along.reshape(B, S * D).astype(np.float32)
        mean = a.mean(axis=-1)
        std = a.std(axis=-1, ddof=1)                 # torch.std is unbiased
        clamp = (mean + 3.0 * std)[:, None]
        a = np.clip(a, 0.0, clamp).reshape(B, S, D)
        a = np.asarray(_blur5x5(jnp.asarray(a)))     # Pallas blur conv
        meanD = (a * np.arange(D, dtype=np.float32)).sum(-1) / segmentLen_batch[:, None]
        # aligned = meanD - start - (D//2 - start) == meanD - D//2
        aligned = np.rint(meanD - D // 2).astype(np.int32)
        return meanD, aligned

    meanX, alignedX = _project(alongX, W)
    meanY, alignedY = _project(alongY, H)

    container_batch = []
    for bi in range(B):
        segmentLen = int(segmentLen_batch[bi])
        usable = segmentLen * S
        x, y = xy_batch[bi]
        x = x[:usable].astype(np.int32) - np.repeat(alignedX[bi], segmentLen)
        x = np.clip(x, 0, W - 1)
        y = y[:usable].astype(np.int32) - np.repeat(alignedY[bi], segmentLen)
        y = np.clip(y, 0, H - 1)
        idx = (x + W * y).astype(np.int64).reshape(S, segmentLen)
        container = np.zeros(W * H, dtype=np.int32)
        np.add.at(container, idx[sIdx], 1)
        for si in range(sIdx + 1, eIdx):
            if (_outlier1d(meanX[bi, si:si + 10], thresh=2)[0]
                    or _outlier1d(meanY[bi, si:si + 10], thresh=2)[0]):
                continue
            np.add.at(container, idx[si], 1)
        container = container.astype(np.float32)
        clampVal = container.mean() + 2.0 * container.std(ddof=1)
        container = np.clip(container, 0.0, clampVal) / clampVal
        # TODO(synk): mode==0 training-time random noise augmentation (python
        # `random`) skipped; deterministic eval-mode (mode != 0) semantics used.
        container_batch.append(container)
    return np.stack(container_batch).reshape(B, 1, H, W).astype(np.float32)


# ----------------------------------------------------------------------------
# Classifier
# ----------------------------------------------------------------------------
class ClassifierPallas:
    def __init__(self, dimension=(24, 32), crop_dimension=(32, 32),
                 num_classes=101, seed=1):
        self.dimension = dimension
        self.crop_dimension = crop_dimension
        self.num_classes = num_classes
        self.mode = 1    # eval mode
        key = jax.random.PRNGKey(seed)
        self.params, block_cfg = build_resnet34_params(key, num_classes)

        def _fwd(params, frame):
            frame_cropped = crop_and_resize_to_resolution(frame, crop_dimension)
            # USE_MEDIAN_FILTER is False -> medianFilter not applied.
            pred = resnet34_forward(params, block_cfg, frame_cropped)
            return pred, frame_cropped

        self._fwd = jax.jit(_fwd)

    def forward(self, events):
        frame = quantization_layer_forward(events, self.dimension, self.mode)
        pred, frame_cropped = self._fwd(self.params, jnp.asarray(frame))
        return pred, frame_cropped


if __name__ == "__main__":
    B = 2
    H, W = 24, 32          # small event-camera resolution (module default 180x240)
    N_EVENTS = 480         # 48 segments x 10 events
    NUM_CLASSES = 101

    key = jax.random.PRNGKey(0)
    events = []
    for bi in range(B):
        key, kx, ky, kp = jax.random.split(key, 4)
        ex = jax.random.randint(kx, (N_EVENTS,), 0, W)
        ey = jax.random.randint(ky, (N_EVENTS,), 0, H)
        et = jnp.arange(N_EVENTS)
        ep = jax.random.randint(kp, (N_EVENTS,), 0, 2)
        eb = jnp.full((N_EVENTS,), bi)
        ev = np.asarray(jnp.stack([ex, ey, et, ep, eb], axis=1), dtype=np.float32)
        events.append(ev)

    model = ClassifierPallas(dimension=(H, W), crop_dimension=(32, 32),
                             num_classes=NUM_CLASSES)
    pred, frame_cropped = model.forward(events)
    pred = jax.block_until_ready(pred)
    frame_cropped = jax.block_until_ready(frame_cropped)

    assert pred.shape == (B, NUM_CLASSES)
    assert frame_cropped.shape == (B, 1, 32, 32)
    assert np.all(np.isfinite(np.asarray(pred)))
    assert np.all(np.isfinite(np.asarray(frame_cropped)))
    print("KERNEL_OK")
</pallas_src>

<mosaic_0001>
module attributes {stable_mosaic.version = 11 : i64} {
  func.func @_mm_kernel(%arg0: i32, %arg1: i32, %arg2: i32, %arg3: memref<128x128xf32, #tpu.memory_space<vmem>>, %arg4: memref<128x128xf32, #tpu.memory_space<vmem>>, %arg5: memref<1x128xf32, #tpu.memory_space<vmem>>, %arg6: memref<128x128xf32, #tpu.memory_space<vmem>>, %arg7: memref<128x128xf32, #tpu.memory_space<vmem>>) attributes {dimension_semantics = [#tpu.dimension_semantics<parallel>, #tpu.dimension_semantics<parallel>, #tpu.dimension_semantics<arbitrary>], iteration_bounds = array<i64: 24, 1, 1>, scalar_prefetch = 0 : i64, scratch_operands = 1 : i64, tpu.core_type = #tpu.core_type<tc>, window_params = [{transform_indices = @transform_0, window_bounds = array<i64: 128, 128>}, {transform_indices = @transform_1, window_bounds = array<i64: 128, 128>}, {transform_indices = @transform_2, window_bounds = array<i64: 1, 128>}, {transform_indices = @transform_3, window_bounds = array<i64: 128, 128>}]} {
    %c0_i32 = arith.constant 0 : i32
    %0 = arith.cmpi eq, %arg2, %c0_i32 : i32
    %1 = arith.extui %0 : i1 to i32
    %c0_i32_0 = arith.constant 0 : i32
    %2 = arith.cmpi ne, %1, %c0_i32_0 : i32
    scf.if %2 {
      %cst_10 = arith.constant 0.000000e+00 : f32
      %12 = vector.broadcast %cst_10 : f32 to vector<128x128xf32>
      %c0_11 = arith.constant 0 : index
      %c0_12 = arith.constant 0 : index
      %13 = vector.load %arg7[%c0_11, %c0_12] : memref<128x128xf32, #tpu.memory_space<vmem>>, vector<128x128xf32>
      tpu.vector_store %arg7[%c0_11, %c0_12], %12 {strides = array<i32>} : memref<128x128xf32, #tpu.memory_space<vmem>>, vector<128x128xf32>,
    } else {
    }
    %c0 = arith.constant 0 : index
    %c0_1 = arith.constant 0 : index
    %3 = vector.load %arg7[%c0, %c0_1] : memref<128x128xf32, #tpu.memory_space<vmem>>, vector<128x128xf32>
    %c0_2 = arith.constant 0 : index
    %c0_3 = arith.constant 0 : index
    %4 = vector.load %arg3[%c0_2, %c0_3] : memref<128x128xf32, #tpu.memory_space<vmem>>, vector<128x128xf32>
    %c0_4 = arith.constant 0 : index
    %c0_5 = arith.constant 0 : index
    %5 = vector.load %arg4[%c0_4, %c0_5] : memref<128x128xf32, #tpu.memory_space<vmem>>, vector<128x128xf32>
    %cst = arith.constant dense<0.000000e+00> : vector<128x128xf32>
    %6 = tpu.matmul %4, %5, %cst {dimension_numbers = #tpu.dot_dimension_numbers<[1], [0], [0], [1], [0, 0, 1, 1], [], []>} : vector<128x128xf32>, vector<128x128xf32>, vector<128x128xf32> -> vector<128x128xf32>
    %7 = arith.addf %3, %6 : vector<128x128xf32>
    %c0_6 = arith.constant 0 : index
    %c0_7 = arith.constant 0 : index
    %8 = vector.load %arg7[%c0_6, %c0_7] : memref<128x128xf32, #tpu.memory_space<vmem>>, vector<128x128xf32>
    tpu.vector_store %arg7[%c0_6, %c0_7], %7 {strides = array<i32>} : memref<128x128xf32, #tpu.memory_space<vmem>>, vector<128x128xf32>,
    %c0_i32_8 = arith.constant 0 : i32
    %9 = arith.cmpi eq, %arg2, %c0_i32_8 : i32
    %10 = arith.extui %9 : i1 to i32
    %c0_i32_9 = arith.constant 0 : i32
    %11 = arith.cmpi ne, %10, %c0_i32_9 : i32
    scf.if %11 {
      %c0_10 = arith.constant 0 : index
      %c0_11 = arith.constant 0 : index
      %12 = vector.load %arg7[%c0_10, %c0_11] : memref<128x128xf32, #tpu.memory_space<vmem>>, vector<128x128xf32>
      %c0_12 = arith.constant 0 : index
      %c0_13 = arith.constant 0 : index
      %13 = vector.load %arg5[%c0_12, %c0_13] : memref<1x128xf32, #tpu.memory_space<vmem>>, vector<1x128xf32>
      %14 = vector.broadcast %13 : vector<1x128xf32> to vector<128x128xf32>
      %15 = arith.addf %12, %14 : vector<128x128xf32>
      %c0_14 = arith.constant 0 : index
      %c0_15 = arith.constant 0 : index
      %16 = vector.load %arg6[%c0_14, %c0_15] : memref<128x128xf32, #tpu.memory_space<vmem>>, vector<128x128xf32>
      tpu.vector_store %arg6[%c0_14, %c0_15], %15 {strides = array<i32>} : memref<128x128xf32, #tpu.memory_space<vmem>>, vector<128x128xf32>,
    } else {
    }
    return
  }
  func.func @transform_0(%arg0: i32, %arg1: i32, %arg2: i32) -> (i32, i32) {
    %c0_i32 = arith.constant 0 : i32
    return %arg0, %arg2 : i32, i32
  }
  func.func @transform_1(%arg0: i32, %arg1: i32, %arg2: i32) -> (i32, i32) {
    %c0_i32 = arith.constant 0 : i32
    return %arg2, %arg1 : i32, i32
  }
  func.func @transform_2(%arg0: i32, %arg1: i32, %arg2: i32) -> (i32, i32) {
    %c0_i32 = arith.constant 0 : i32
    %c0_i32_0 = arith.constant 0 : i32
    return %c0_i32, %arg1 : i32, i32
  }
  func.func @transform_3(%arg0: i32, %arg1: i32, %arg2: i32) -> (i32, i32) {
    %c0_i32 = arith.constant 0 : i32
    return %arg0, %arg1 : i32, i32
  }
}

</mosaic_0001>

<bundles_post_ra>
// kernel: _blur5x5.1
= control target key start
LH: loop header
LB: loop body
LE: loop exit
PB: predicated region body
PF: predicated region fallthrough
CT: control target
= control target key end

     0   :  { %s720_s12 = smov 0   ;;  %s722_s13 = smov 0   ;;  %s850_s0 = inlined_call_operand.vmem [shape: f32[3072,128], index: 0, kind: input, shape index: {}]   ;;  %s851_s1 = inlined_call_operand.vmem [shape: f32[128,128], index: 1, kind: input, shape index: {}]   ;;  %s852_s2 = inlined_call_operand.vmem [shape: f32[1,128], index: 2, kind: input, shape index: {}]   ;;  %s853_s3 = inlined_call_operand.vmem [shape: f32[3072,128], index: 3, kind: output, shape index: {}]  }
   0x1   :  { %s724_s14 = smov 0  }
   0x2 LB: > { %s32_s15 = sadd.s32 1, %s694_s13  ;;  %p596_p0 = scmp.ge.s32.totalorder %s698_s14, 1  ;;  %s698_s14 = sphi %s724_s14, %s13_s14   ;;  %s694_s13 = sphi %s722_s13, %s855_s13   ;;  %s690_s12 = sphi %s720_s12, %s854_s12  }
   0x3   : > { %p34_p1 = scmp.ge.s32.totalorder %s32_s15, 24  ;;  %p188_p2 = scmp.lt.s32.totalorder %s698_s14, 25 }
   0x5   : > { %s857_s15 = smov (%p34_p1, %s32_s15), 0  ;;  %p189_p3 = pnand %p596_p0, %p188_p2 }
   0x6   : > { %s597_s5 = sshll.u32 (!%p189_p3), %s690_s12, 4 }
   0x7   : > { %192 = sbr.rel (%p189_p3) target bundleno = 204 (0xcc), region = 32  ;;  %p230_p4 = scmp.lt.s32.totalorder (!%p189_p3), %s597_s5, 383 }
   0xc   : > { %v326_v0 = vld [vmem:[%s851_s1 + $0x78] sm:$0xff]  ;;  %v325_v1 = vld [vmem:[%s851_s1 + $0x70] sm:$0xff]  ;;  %v324_v2 = vld [vmem:[%s851_s1 + $0x68] sm:$0xff]  ;;  %s859_s5 = smov (!%p230_p4, %s597_s5), 383 }
   0xd   : > { %604 = vmatpush.msra.mxu2 %v326_v0  ;;  %605 = vmatpush.msra.mxu3 %v326_v0  ;;  %v323_v3 = vld [vmem:[%s851_s1 + $0x60] sm:$0xff]  ;;  %v322_v4 = vld [vmem:[%s851_s1 + $0x58] sm:$0xff]  ;;  %v321_v5 = vld [vmem:[%s851_s1 + $0x50] sm:$0xff]  ;;  %s598_s19 = sshll.u32 %s859_s5, 3 }
   0xe   : > { %327 = vmatpush.msra.mxu0 %v326_v0  ;;  %603 = vmatpush.msra.mxu1 %v326_v0  ;;  %v320_v6 = vld [vmem:[%s851_s1 + $0x48] sm:$0xff]  ;;  %v319_v7 = vld [vmem:[%s851_s1 + $0x40] sm:$0xff]  ;;  %v318_v8 = vld [vmem:[%s851_s1 + $0x38] sm:$0xff]  ;;  %s794_s26 = scalar_lea.vmem %s850_s0, %s598_s19  ;;  %s823_s7 = scalar_lea.vmem %s853_s3, %s598_s19 }
   0xf   : > { %607 = vmatpush.msra.mxu2 %v325_v1  ;;  %608 = vmatpush.msra.mxu3 %v325_v1  ;;  %v317_v9 = vld [vmem:[%s851_s1 + $0x30] sm:$0xff]  ;;  %v316_v10 = vld [vmem:[%s851_s1 + $0x28] sm:$0xff]  ;;  %v315_v11 = vld [vmem:[%s851_s1 + $0x20] sm:$0xff] }
  0x10   : > { %328 = vmatpush.msra.mxu0 %v325_v1  ;;  %606 = vmatpush.msra.mxu1 %v325_v1  ;;  %v314_v12 = vld [vmem:[%s851_s1 + $0x18] sm:$0xff]  ;;  %v313_v13 = vld [vmem:[%s851_s1 + $0x10] sm:$0xff]  ;;  %v312_v14 = vld [vmem:[%s851_s1 + $0x8] sm:$0xff] }
  0x11   : > { %610 = vmatpush.msra.mxu2 %v324_v2  ;;  %611 = vmatpush.msra.mxu3 %v324_v2  ;;  %v311_v15 = vld [vmem:[%s851_s1] sm:$0xff]  ;;  %v304_v20 = vld [vmem:[%s794_s26 + $0x48] sm:$0xff]  ;;  %v305_v24 = vld [vmem:[%s794_s26 + $0x50] sm:$0xff] }
  0x12   : > { %329 = vmatpush.msra.mxu0 %v324_v2  ;;  %609 = vmatpush.msra.mxu1 %v324_v2  ;;  %v303_v16 = vld [vmem:[%s794_s26 + $0x40] sm:$0xff]  ;;  %v308_v21 = vld [vmem:[%s794_s26 + $0x68] sm:$0xff]  ;;  %v309_v25 = vld [vmem:[%s794_s26 + $0x70] sm:$0xff] }
  0x13   : > { %613 = vmatpush.msra.mxu2 %v323_v3  ;;  %614 = vmatpush.msra.mxu3 %v323_v3  ;;  %v307_v17 = vld [vmem:[%s794_s26 + $0x60] sm:$0xff]  ;;  %v296_v22 = vld [vmem:[%s794_s26 + $0x8] sm:$0xff]  ;;  %v297_v26 = vld [vmem:[%s794_s26 + $0x10] sm:$0xff] }
  0x14   : > { %330 = vmatpush.msra.mxu0 %v323_v3  ;;  %612 = vmatpush.msra.mxu1 %v323_v3  ;;  %v295_v18 = vld [vmem:[%s794_s26] sm:$0xff]  ;;  %v300_v23 = vld [vmem:[%s794_s26 + $0x28] sm:$0xff]  ;;  %v301_v27 = vld [vmem:[%s794_s26 + $0x30] sm:$0xff] }
  0x15   : > { %616 = vmatpush.msra.mxu2 %v322_v4  ;;  %617 = vmatpush.msra.mxu3 %v322_v4  ;;  %v299_v19 = vld [vmem:[%s794_s26 + $0x20] sm:$0xff]  ;;  %v306_v28 = vld [vmem:[%s794_s26 + $0x58] sm:$0xff] }
  0x16   : > { %331 = vmatpush.msra.mxu0 %v322_v4  ;;  %615 = vmatpush.msra.mxu1 %v322_v4  ;;  %v310_v29 = vld [vmem:[%s794_s26 + $0x78] sm:$0xff]  ;;  %v675_v32 = vld [vmem:[%s852_s2] ss:$0 sm:$0xff] }
  0x17   : > { %619 = vmatpush.msra.mxu2 %v321_v5  ;;  %620 = vmatpush.msra.mxu3 %v321_v5  ;;  %v298_v30 = vld [vmem:[%s794_s26 + $0x18] sm:$0xff] }
  0x18   : > { %332 = vmatpush.msra.mxu0 %v321_v5  ;;  %618 = vmatpush.msra.mxu1 %v321_v5  ;;  %v302_v31 = vld [vmem:[%s794_s26 + $0x38] sm:$0xff] }
  0x19   : > { %622 = vmatpush.msra.mxu2 %v320_v6  ;;  %623 = vmatpush.msra.mxu3 %v320_v6 }
  0x1a   : > { %333 = vmatpush.msra.mxu0 %v320_v6  ;;  %621 = vmatpush.msra.mxu1 %v320_v6 }
  0x1b   : > { %625 = vmatpush.msra.mxu2 %v319_v7  ;;  %626 = vmatpush.msra.mxu3 %v319_v7 }
  0x1c   : > { %334 = vmatpush.msra.mxu0 %v319_v7  ;;  %624 = vmatpush.msra.mxu1 %v319_v7 }
  0x1d   : > { %628 = vmatpush.msra.mxu2 %v318_v8  ;;  %629 = vmatpush.msra.mxu3 %v318_v8 }
  0x1e   : > { %335 = vmatpush.msra.mxu0 %v318_v8  ;;  %627 = vmatpush.msra.mxu1 %v318_v8 }
  0x1f   : > { %631 = vmatpush.msra.mxu2 %v317_v9  ;;  %632 = vmatpush.msra.mxu3 %v317_v9 }
  0x20   : > { %336 = vmatpush.msra.mxu0 %v317_v9  ;;  %630 = vmatpush.msra.mxu1 %v317_v9 }
  0x21   : > { %634 = vmatpush.msra.mxu2 %v316_v10  ;;  %635 = vmatpush.msra.mxu3 %v316_v10 }
  0x22   : > { %337 = vmatpush.msra.mxu0 %v316_v10  ;;  %633 = vmatpush.msra.mxu1 %v316_v10 }
  0x23   : > { %637 = vmatpush.msra.mxu2 %v315_v11  ;;  %638 = vmatpush.msra.mxu3 %v315_v11 }
  0x24   : > { %338 = vmatpush.msra.mxu0 %v315_v11  ;;  %636 = vmatpush.msra.mxu1 %v315_v11 }
  0x25   : > { %640 = vmatpush.msra.mxu2 %v314_v12  ;;  %641 = vmatpush.msra.mxu3 %v314_v12 }
  0x26   : > { %339 = vmatpush.msra.mxu0 %v314_v12  ;;  %639 = vmatpush.msra.mxu1 %v314_v12 }
  0x27   : > { %643 = vmatpush.msra.mxu2 %v313_v13  ;;  %644 = vmatpush.msra.mxu3 %v313_v13 }
  0x28   : > { %340 = vmatpush.msra.mxu0 %v313_v13  ;;  %642 = vmatpush.msra.mxu1 %v313_v13 }
  0x29   : > { %646 = vmatpush.msra.mxu2 %v312_v14  ;;  %647 = vmatpush.msra.mxu3 %v312_v14 }
  0x2a   : > { %341 = vmatpush.msra.mxu0 %v312_v14  ;;  %645 = vmatpush.msra.mxu1 %v312_v14 }
  0x2b   : > { %649 = vmatpush.msra.mxu2 %v311_v15  ;;  %650 = vmatpush.msra.mxu3 %v311_v15 }
  0x2c   : > { %367 = vmatmul.f32.vlgmr.msra.gmra.mxu2 %v303_v16  ;;  %379 = vmatmul.f32.vlgmr.msra.gmra.mxu3 %v307_v17 }
  0x2d   : > { %342 = vmatpush.msra.mxu0 %v311_v15  ;;  %648 = vmatpush.msra.mxu1 %v311_v15 }
  0x2e   : > { %343 = vmatmul.f32.vlgmr.msra.gmra.mxu0 %v295_v18  ;;  %355 = vmatmul.f32.vlgmr.msra.gmra.mxu1 %v299_v19 }
  0x34   : > { %370 = vmatmul.f32.gmra.mxu2 %v304_v20  ;;  %382 = vmatmul.f32.gmra.mxu3 %v308_v21 }
  0x36   : > { %346 = vmatmul.f32.gmra.mxu0 %v296_v22  ;;  %358 = vmatmul.f32.gmra.mxu1 %v300_v23 }
  0x3c   : > { %373 = vmatmul.f32.gmra.mxu2 %v305_v24  ;;  %385 = vmatmul.f32.gmra.mxu3 %v309_v25 }
  0x3e   : > { %349 = vmatmul.f32.gmra.mxu0 %v297_v26  ;;  %361 = vmatmul.f32.gmra.mxu1 %v301_v27 }
  0x44   : > { %376 = vmatmul.f32.gmra.mxu2 %v306_v28  ;;  %388 = vmatmul.f32.gmra.mxu3 %v310_v29 }
  0x46   : > { %352 = vmatmul.f32.gmra.mxu0 %v298_v30  ;;  %364 = vmatmul.f32.gmra.mxu1 %v302_v31 }
  0xab   : > { %v344_v33 = vpop.f32.mrf.mxu0  ;;  %v356_v34 = vpop.f32.mrf.mxu1 }
  0xac   : > { %v447_v35 = vadd.f32 %v675_v32, %v344_v33  ;;  %v451_v36 = vadd.f32 %v675_v32, %v356_v34 }
  0xae   : > { %463 = vst [vmem:[%s823_s7] sm:$0xff] %v447_v35 }
  0xaf   : > { %467 = vst [vmem:[%s823_s7 + $0x20] sm:$0xff] %v451_v36  ;;  %v368_v37 = vpop.f32.mrf.mxu2  ;;  %v380_v38 = vpop.f32.mrf.mxu3 }
  0xb0   : > { %v455_v39 = vadd.f32 %v675_v32, %v368_v37  ;;  %v459_v40 = vadd.f32 %v675_v32, %v380_v38 }
  0xb2   : > { %471 = vst [vmem:[%s823_s7 + $0x40] sm:$0xff] %v455_v39 }
  0xb3   : > { %475 = vst [vmem:[%s823_s7 + $0x60] sm:$0xff] %v459_v40  ;;  %v347_v41 = vpop.f32.mrf.mxu0  ;;  %v359_v42 = vpop.f32.mrf.mxu1 }
  0xb4   : > { %v448_v43 = vadd.f32 %v675_v32, %v347_v41  ;;  %v452_v44 = vadd.f32 %v675_v32, %v359_v42 }
  0xb6   : > { %464 = vst [vmem:[%s823_s7 + $0x8] sm:$0xff] %v448_v43 }
  0xb7   : > { %468 = vst [vmem:[%s823_s7 + $0x28] sm:$0xff] %v452_v44  ;;  %v371_v45 = vpop.f32.mrf.mxu2  ;;  %v383_v46 = vpop.f32.mrf.mxu3 }
  0xb8   : > { %v456_v47 = vadd.f32 %v675_v32, %v371_v45  ;;  %v460_v48 = vadd.f32 %v675_v32, %v383_v46 }
  0xba   : > { %472 = vst [vmem:[%s823_s7 + $0x48] sm:$0xff] %v456_v47 }
  0xbb   : > { %476 = vst [vmem:[%s823_s7 + $0x68] sm:$0xff] %v460_v48  ;;  %v350_v49 = vpop.f32.mrf.mxu0  ;;  %v362_v50 = vpop.f32.mrf.mxu1 }
  0xbc   : > { %v449_v51 = vadd.f32 %v675_v32, %v350_v49  ;;  %v453_v52 = vadd.f32 %v675_v32, %v362_v50 }
  0xbe   : > { %465 = vst [vmem:[%s823_s7 + $0x10] sm:$0xff] %v449_v51 }
  0xbf   : > { %469 = vst [vmem:[%s823_s7 + $0x30] sm:$0xff] %v453_v52  ;;  %v374_v53 = vpop.f32.mrf.mxu2  ;;  %v386_v54 = vpop.f32.mrf.mxu3 }
  0xc0   : > { %v457_v55 = vadd.f32 %v675_v32, %v374_v53  ;;  %v461_v56 = vadd.f32 %v675_v32, %v386_v54 }
  0xc2   : > { %473 = vst [vmem:[%s823_s7 + $0x50] sm:$0xff] %v457_v55 }
  0xc3   : > { %477 = vst [vmem:[%s823_s7 + $0x70] sm:$0xff] %v461_v56  ;;  %v353_v57 = vpop.f32.mrf.mxu0  ;;  %v365_v58 = vpop.f32.mrf.mxu1 }
  0xc4   : > { %v450_v59 = vadd.f32 %v675_v32, %v353_v57  ;;  %v454_v60 = vadd.f32 %v675_v32, %v365_v58 }
  0xc6   : > { %466 = vst [vmem:[%s823_s7 + $0x18] sm:$0xff] %v450_v59 }
  0xc7   : > { %470 = vst [vmem:[%s823_s7 + $0x38] sm:$0xff] %v454_v60  ;;  %v377_v61 = vpop.f32.mrf.mxu2  ;;  %v389_v62 = vpop.f32.mrf.mxu3 }
  0xc8   : > { %v458_v63 = vadd.f32 %v675_v32, %v377_v61  ;;  %v462_v0 = vadd.f32 %v675_v32, %v389_v62 }
  0xca   : > { %474 = vst [vmem:[%s823_s7 + $0x58] sm:$0xff] %v458_v63 }
  0xcb   : > { %478 = vst [vmem:[%s823_s7 + $0x78] sm:$0xff] %v462_v0 }
  0xcc PF: > { %s13_s14 = sadd.s32 1, %s698_s14   ;;  %s854_s12 = smov %s694_s13 }
  0xcd   : > { %p10_p5 = scmp.ge.s32.totalorder %s13_s14, 26   ;;  %s855_s13 = smov %s857_s15 }
  0xcf   :  { %12 = sbr.rel (!%p10_p5) target bundleno = 2 (0x2), region = 76 }

</bundles_post_ra>
